<compile_context>
chip_gen: v6e
topology: v6e:2x2x1
jax: 0.10.0
libtpu: 0.0.40
codegen_flags: <defaults>
</compile_context>

<pallas_src>
import functools

import jax
import jax.numpy as jnp
from jax.experimental import pallas as pl
from jax.experimental.pallas import tpu as pltpu


def _tpu_num_cores():
    """Best-effort TensorCores-per-chip; defaults to 1 (correct for v5e/v6e)."""
    try:
        info = pltpu.get_tpu_info()
    except Exception:
        return 1
    for name in ("num_cores", "core_count", "num_tensorcores", "tensor_core_count"):
        v = getattr(info, name, None)
        if isinstance(v, int) and v > 0:
            return v
    return 1


def _control_norm_kernel(
    x_ref, o_ref, m_out_ref, v_out_ref,
    m_scr, v_scr, mu_scr, var_scr, mprev_scr, iscale_scr,
    *, afwd, eps, inv_n, samples_per_block, n_valid, unroll,
):
    """One grid step == one (B-sample, C_blk-channel, HW) tile.

    x_ref / o_ref        : (B, C_blk, HW) VMEM tiles
    m_out_ref, v_out_ref : (C_blk, 1) final running stats (written on last step)
    m_scr, v_scr         : (C_blk, 1) f32 running mean / var carry (persist
                           across the sequential batch grid axis)
    mu_scr, var_scr      : (B, C_blk, 1) per-sample batch moments
    mprev_scr, iscale_scr: (B, C_blk, 1) per-sample m_{t-1} / rsqrt(var_{t-1}+eps)
    """
    n_idx = pl.program_id(1)

    # Initialize the carry at the start of each channel block's batch pass
    # (m = 0, var = 1, as in init_norm_params).
    @pl.when(n_idx == 0)
    def _():
        m_scr[...] = jnp.zeros_like(m_scr)
        v_scr[...] = jnp.ones_like(v_scr)

    # ---- Batched per-sample moments (two-pass, matches the reference). ----
    xf = x_ref[...].astype(jnp.float32)                  # (B, C_blk, HW)
    mu = jnp.sum(xf, axis=-1, keepdims=True) * inv_n     # (B, C_blk, 1)
    cen = xf - mu
    mu_scr[...] = mu
    var_scr[...] = jnp.sum(cen * cen, axis=-1, keepdims=True) * inv_n

    one_m = 1.0 - afwd

    # ---- Tiny sequential EMA recurrence on (C_blk, 1) vectors. ----
    def body(s, carry):
        m_prev = m_scr[...]
        v_prev = v_scr[...]
        # Record the statistics used to normalize sample s.
        mprev_scr[s] = m_prev
        iscale_scr[s] = jax.lax.rsqrt(v_prev + eps)      # EUP
        d = mu_scr[s] - m_prev
        v_new = afwd * v_prev + one_m * var_scr[s] + afwd * one_m * d * d
        m_new = m_prev + one_m * d
        # Skip the state update for samples beyond the real batch (partial
        # tail block reads unspecified data; select keeps the carry clean).
        valid = (n_idx * samples_per_block + s) < n_valid
        m_scr[...] = jnp.where(valid, m_new, m_prev)
        v_scr[...] = jnp.where(valid, v_new, v_prev)
        return carry

    jax.lax.fori_loop(0, samples_per_block, body, 0, unroll=unroll)

    # ---- One batched normalize + lane-dense store for the whole tile. ----
    o_ref[...] = ((xf - mprev_scr[...]) * iscale_scr[...]).astype(o_ref.dtype)

    # Emit final running statistics once, after the last batch block.
    @pl.when(n_idx == pl.num_programs(1) - 1)
    def _():
        m_out_ref[...] = m_scr[...]
        v_out_ref[...] = v_scr[...]


def control_norm_2d(x, *, alpha_fwd=0.999, eps=1e-5, max_samples_per_block=None):
    """Training-mode forward of ControlNorm2DLoop.

    x: (N, C, H, W). Returns (y, m, var):
      y   : (N, C, H, W) normalized output, same dtype as x
      m   : (C,) float32 final running mean   (module buffer `m`)
      var : (C,) float32 final running variance (module buffer `var`)
    Running buffers start at m=0, var=1 (as in init_norm_params).
    """
    N, C, H, W = x.shape
    HW = H * W
    itemsize = jnp.dtype(x.dtype).itemsize

    # Channel split across TensorCores: only on multi-core chips and only when
    # each half stays sublane-packed (f32: 8 rows/vreg, bf16: 16, 8-bit: 32).
    sublane = {4: 8, 2: 16, 1: 32}.get(itemsize, 8)
    if _tpu_num_cores() >= 2 and C >= 2 * sublane and C % (2 * sublane) == 0:
        nc, c_blk = 2, C // 2
    else:
        nc, c_blk = 1, C

    # Samples per grid step from a VMEM working-set budget:
    #   in + out tiles double-buffered (4x) + ~2 f32 body temporaries + scratch.
    vmem_budget = 40 * 1024 * 1024
    per_sample = c_blk * HW * (4 * itemsize + 2 * 4) + 16 * c_blk * 4
    B = int(max(1, min(N, vmem_budget // max(per_sample, 1))))
    if max_samples_per_block is not None:
        B = int(max(1, min(B, int(max_samples_per_block))))
    n_blocks = int(pl.cdiv(N, B))

    est_vmem = B * per_sample + (1 << 20)
    vmem_limit = None
    if est_vmem > 14 * 1024 * 1024:
        # Raise the scoped-VMEM limit when tiles are large; cap at 48 MiB so it
        # is safe on v7x (64 MiB/TC) as well as v5e/v6e (128 MiB physical).
        vmem_limit = int(min(48 * 1024 * 1024,
                             max(32 * 1024 * 1024, est_vmem + 4 * 1024 * 1024)))

    x3 = x.reshape(N, C, HW)   # free view: no pad, no copy

    kernel = functools.partial(
        _control_norm_kernel,
        afwd=float(alpha_fwd),
        eps=float(eps),
        inv_n=1.0 / float(HW),
        samples_per_block=B,
        n_valid=N,
        unroll=int(min(B, 8)),
    )

    cost = pl.CostEstimate(
        flops=int(8 * N * C * HW),
        transcendentals=int(N * C),
        bytes_accessed=int(2 * N * C * HW * itemsize),
    )

    out3, m_out, v_out = pl.pallas_call(
        kernel,
        out_shape=(
            jax.ShapeDtypeStruct((N, C, HW), x.dtype),
            jax.ShapeDtypeStruct((C, 1), jnp.float32),
            jax.ShapeDtypeStruct((C, 1), jnp.float32),
        ),
        grid_spec=pltpu.PrefetchScalarGridSpec(
            num_scalar_prefetch=0,
            grid=(nc, n_blocks),
            in_specs=[pl.BlockSpec((B, c_blk, HW), lambda c, n: (n, c, 0))],
            out_specs=(
                pl.BlockSpec((B, c_blk, HW), lambda c, n: (n, c, 0)),
                pl.BlockSpec((c_blk, 1), lambda c, n: (c, 0)),
                pl.BlockSpec((c_blk, 1), lambda c, n: (c, 0)),
            ),
            scratch_shapes=[
                pltpu.VMEM((c_blk, 1), jnp.float32),      # running mean carry
                pltpu.VMEM((c_blk, 1), jnp.float32),      # running var carry
                pltpu.VMEM((B, c_blk, 1), jnp.float32),   # per-sample batch mean
                pltpu.VMEM((B, c_blk, 1), jnp.float32),   # per-sample batch var
                pltpu.VMEM((B, c_blk, 1), jnp.float32),   # per-sample m_{t-1}
                pltpu.VMEM((B, c_blk, 1), jnp.float32),   # per-sample rsqrt(var+eps)
            ],
        ),
        compiler_params=pltpu.CompilerParams(
            # channel blocks independent; batch carry must stay sequential
            dimension_semantics=("parallel", "arbitrary"),
            vmem_limit_bytes=vmem_limit,
        ),
        cost_estimate=cost,
    )(x3)

    y = out3.reshape(N, C, H, W)
    return y, m_out[:, 0], v_out[:, 0]


def control_norm_2d_ref(x, *, alpha_fwd=0.999, eps=1e-5):
    """Pure-JAX reference mirroring the PyTorch loop exactly."""
    N, C, H, W = x.shape
    n = H * W
    m = jnp.zeros((C,), jnp.float32)
    var = jnp.ones((C,), jnp.float32)
    outs = []
    xf = x.astype(jnp.float32)
    for idx in range(N):
        xi = xf[idx]                                       # (C, H, W)
        mu = jnp.sum(xi, axis=(1, 2)) / n                  # (C,)
        var_b = jnp.sum((xi - mu[:, None, None]) ** 2, axis=(1, 2)) / n
        scale = jnp.sqrt(var + eps)
        outs.append((xi - m[:, None, None]) / scale[:, None, None])
        d = mu - m
        var = alpha_fwd * var + (1 - alpha_fwd) * var_b + alpha_fwd * (1 - alpha_fwd) * d * d
        m = m + (1 - alpha_fwd) * d
    return jnp.stack(outs).astype(x.dtype), m, var


if __name__ == "__main__":
    # Primary check: module-scale small shapes.
    key = jax.random.PRNGKey(0)
    N, C, H, W = 2, 4, 16, 16
    x = jax.random.normal(key, (N, C, H, W), dtype=jnp.float32)

    y, m, var = control_norm_2d(x)
    y = jax.block_until_ready(y)

    y_ref, m_ref, v_ref = control_norm_2d_ref(x)
    assert y.shape == (N, C, H, W)
    assert jnp.allclose(y, y_ref, atol=1e-5, rtol=1e-5), "output mismatch vs reference"
    assert jnp.allclose(m, m_ref, atol=1e-5, rtol=1e-5), "running mean mismatch"
    assert jnp.allclose(var, v_ref, atol=1e-5, rtol=1e-5), "running var mismatch"

    # Secondary check: partial tail batch block + HW not a multiple of 128
    # (exercises the no-padding path end to end).
    N2, C2, H2, W2 = 5, 4, 8, 8
    x2 = jax.random.normal(jax.random.PRNGKey(1), (N2, C2, H2, W2), dtype=jnp.float32)
    y2, m2, v2 = control_norm_2d(x2, max_samples_per_block=2)
    y2 = jax.block_until_ready(y2)
    y2_ref, m2_ref, v2_ref = control_norm_2d_ref(x2)
    assert jnp.allclose(y2, y2_ref, atol=1e-5, rtol=1e-5), "tail-block output mismatch"
    assert jnp.allclose(m2, m2_ref, atol=1e-5, rtol=1e-5), "tail-block mean mismatch"
    assert jnp.allclose(v2, v2_ref, atol=1e-5, rtol=1e-5), "tail-block var mismatch"

    print("KERNEL_OK")
</pallas_src>

<mosaic_0001>
module attributes {stable_mosaic.version = 11 : i64} {
  func.func @_control_norm_kernel(%arg0: i32, %arg1: i32, %arg2: memref<2x4x256xf32, #tpu.memory_space<vmem>>, %arg3: memref<2x4x256xf32, #tpu.memory_space<vmem>>, %arg4: memref<4x1xf32, #tpu.memory_space<vmem>>, %arg5: memref<4x1xf32, #tpu.memory_space<vmem>>, %arg6: memref<4x1xf32, #tpu.memory_space<vmem>>, %arg7: memref<4x1xf32, #tpu.memory_space<vmem>>, %arg8: memref<2x4x1xf32, #tpu.memory_space<vmem>>, %arg9: memref<2x4x1xf32, #tpu.memory_space<vmem>>, %arg10: memref<2x4x1xf32, #tpu.memory_space<vmem>>, %arg11: memref<2x4x1xf32, #tpu.memory_space<vmem>>) attributes {dimension_semantics = [#tpu.dimension_semantics<parallel>, #tpu.dimension_semantics<arbitrary>], iteration_bounds = array<i64: 1, 1>, scalar_prefetch = 0 : i64, scratch_operands = 6 : i64, tpu.core_type = #tpu.core_type<tc>, window_params = [{transform_indices = @transform_0, window_bounds = array<i64: 2, 4, 256>}, {transform_indices = @transform_1, window_bounds = array<i64: 2, 4, 256>}, {transform_indices = @transform_2, window_bounds = array<i64: 4, 1>}, {transform_indices = @transform_3, window_bounds = array<i64: 4, 1>}]} {
    %c0_i32 = arith.constant 0 : i32
    %0 = arith.cmpi eq, %arg1, %c0_i32 : i32
    %1 = arith.extui %0 : i1 to i32
    %c0_i32_0 = arith.constant 0 : i32
    %2 = arith.cmpi ne, %1, %c0_i32_0 : i32
    scf.if %2 {
      %cst_70 = arith.constant 0.000000e+00 : f32
      %105 = vector.broadcast %cst_70 : f32 to vector<4x1xf32>
      %c0_71 = arith.constant 0 : index
      %c0_72 = arith.constant 0 : index
      %106 = vector.load %arg6[%c0_71, %c0_72] : memref<4x1xf32, #tpu.memory_space<vmem>>, vector<4x1xf32>
      tpu.vector_store %arg6[%c0_71, %c0_72], %105 {strides = array<i32>} : memref<4x1xf32, #tpu.memory_space<vmem>>, vector<4x1xf32>,
      %cst_73 = arith.constant 1.000000e+00 : f32
      %107 = vector.broadcast %cst_73 : f32 to vector<4x1xf32>
      %c0_74 = arith.constant 0 : index
      %c0_75 = arith.constant 0 : index
      %108 = vector.load %arg7[%c0_74, %c0_75] : memref<4x1xf32, #tpu.memory_space<vmem>>, vector<4x1xf32>
      tpu.vector_store %arg7[%c0_74, %c0_75], %107 {strides = array<i32>} : memref<4x1xf32, #tpu.memory_space<vmem>>, vector<4x1xf32>,
    } else {
    }
    %c0 = arith.constant 0 : index
    %c0_1 = arith.constant 0 : index
    %c0_2 = arith.constant 0 : index
    %3 = vector.load %arg2[%c0, %c0_1, %c0_2] : memref<2x4x256xf32, #tpu.memory_space<vmem>>, vector<2x4x256xf32>
    %cst = arith.constant dense<0.000000e+00> : vector<2x4xf32>
    %4 = vector.multi_reduction <add>, %3, %cst [2] : vector<2x4x256xf32> to vector<2x4xf32>
    %5 = vector.shape_cast %4 : vector<2x4xf32> to vector<2x4x1xf32>
    %cst_3 = arith.constant 3.906250e-03 : f32
    %6 = vector.broadcast %cst_3 : f32 to vector<2x4x1xf32>
    %7 = arith.mulf %5, %6 : vector<2x4x1xf32>
    %8 = vector.broadcast %7 : vector<2x4x1xf32> to vector<2x4x256xf32>
    %9 = arith.subf %3, %8 : vector<2x4x256xf32>
    %c0_4 = arith.constant 0 : index
    %c0_5 = arith.constant 0 : index
    %c0_6 = arith.constant 0 : index
    %10 = vector.load %arg8[%c0_4, %c0_5, %c0_6] : memref<2x4x1xf32, #tpu.memory_space<vmem>>, vector<2x4x1xf32>
    tpu.vector_store %arg8[%c0_4, %c0_5, %c0_6], %7 {strides = array<i32>} : memref<2x4x1xf32, #tpu.memory_space<vmem>>, vector<2x4x1xf32>,
    %11 = arith.mulf %9, %9 : vector<2x4x256xf32>
    %cst_7 = arith.constant dense<0.000000e+00> : vector<2x4xf32>
    %12 = vector.multi_reduction <add>, %11, %cst_7 [2] : vector<2x4x256xf32> to vector<2x4xf32>
    %13 = vector.shape_cast %12 : vector<2x4xf32> to vector<2x4x1xf32>
    %cst_8 = arith.constant 3.906250e-03 : f32
    %14 = vector.broadcast %cst_8 : f32 to vector<2x4x1xf32>
    %15 = arith.mulf %13, %14 : vector<2x4x1xf32>
    %c0_9 = arith.constant 0 : index
    %c0_10 = arith.constant 0 : index
    %c0_11 = arith.constant 0 : index
    %16 = vector.load %arg9[%c0_9, %c0_10, %c0_11] : memref<2x4x1xf32, #tpu.memory_space<vmem>>, vector<2x4x1xf32>
    tpu.vector_store %arg9[%c0_9, %c0_10, %c0_11], %15 {strides = array<i32>} : memref<2x4x1xf32, #tpu.memory_space<vmem>>, vector<2x4x1xf32>,
    %c0_i32_12 = arith.constant 0 : i32
    %c0_13 = arith.constant 0 : index
    %c0_14 = arith.constant 0 : index
    %17 = vector.load %arg6[%c0_13, %c0_14] : memref<4x1xf32, #tpu.memory_space<vmem>>, vector<4x1xf32>
    %c0_15 = arith.constant 0 : index
    %c0_16 = arith.constant 0 : index
    %18 = vector.load %arg7[%c0_15, %c0_16] : memref<4x1xf32, #tpu.memory_space<vmem>>, vector<4x1xf32>
    %19 = arith.index_cast %c0_i32_12 : i32 to index
    %c0_17 = arith.constant 0 : index
    %c0_18 = arith.constant 0 : index
    %20 = vector.load %arg10[%19, %c0_17, %c0_18] : memref<2x4x1xf32, #tpu.memory_space<vmem>>, vector<1x4x1xf32>
    %21 = vector.shape_cast %20 : vector<1x4x1xf32> to vector<4x1xf32>
    %22 = vector.shape_cast %17 : vector<4x1xf32> to vector<1x4x1xf32>
    tpu.vector_store %arg10[%19, %c0_17, %c0_18], %22 {strides = array<i32>} : memref<2x4x1xf32, #tpu.memory_space<vmem>>, vector<1x4x1xf32>,
    %cst_19 = arith.constant 9.99999974E-6 : f32
    %23 = vector.broadcast %cst_19 : f32 to vector<4x1xf32>
    %24 = arith.addf %18, %23 : vector<4x1xf32>
    %25 = math.rsqrt %24 : vector<4x1xf32>
    %26 = arith.index_cast %c0_i32_12 : i32 to index
    %c0_20 = arith.constant 0 : index
    %c0_21 = arith.constant 0 : index
    %27 = vector.load %arg11[%26, %c0_20, %c0_21] : memref<2x4x1xf32, #tpu.memory_space<vmem>>, vector<1x4x1xf32>
    %28 = vector.shape_cast %27 : vector<1x4x1xf32> to vector<4x1xf32>
    %29 = vector.shape_cast %25 : vector<4x1xf32> to vector<1x4x1xf32>
    tpu.vector_store %arg11[%26, %c0_20, %c0_21], %29 {strides = array<i32>} : memref<2x4x1xf32, #tpu.memory_space<vmem>>, vector<1x4x1xf32>,
    %30 = arith.index_cast %c0_i32_12 : i32 to index
    %c0_22 = arith.constant 0 : index
    %c0_23 = arith.constant 0 : index
    %31 = vector.load %arg8[%30, %c0_22, %c0_23] : memref<2x4x1xf32, #tpu.memory_space<vmem>>, vector<1x4x1xf32>
    %32 = vector.shape_cast %31 : vector<1x4x1xf32> to vector<4x1xf32>
    %33 = arith.subf %32, %17 : vector<4x1xf32>
    %cst_24 = arith.constant 9.990000e-01 : f32
    %34 = vector.broadcast %cst_24 : f32 to vector<4x1xf32>
    %35 = arith.mulf %34, %18 : vector<4x1xf32>
    %36 = arith.index_cast %c0_i32_12 : i32 to index
    %c0_25 = arith.constant 0 : index
    %c0_26 = arith.constant 0 : index
    %37 = vector.load %arg9[%36, %c0_25, %c0_26] : memref<2x4x1xf32, #tpu.memory_space<vmem>>, vector<1x4x1xf32>
    %38 = vector.shape_cast %37 : vector<1x4x1xf32> to vector<4x1xf32>
    %cst_27 = arith.constant 1.000000e-03 : f32
    %39 = vector.broadcast %cst_27 : f32 to vector<4x1xf32>
    %40 = arith.mulf %39, %38 : vector<4x1xf32>
    %41 = arith.addf %35, %40 : vector<4x1xf32>
    %cst_28 = arith.constant 9.990000e-04 : f32
    %42 = vector.broadcast %cst_28 : f32 to vector<4x1xf32>
    %43 = arith.mulf %42, %33 : vector<4x1xf32>
    %44 = arith.mulf %43, %33 : vector<4x1xf32>
    %45 = arith.addf %41, %44 : vector<4x1xf32>
    %cst_29 = arith.constant 1.000000e-03 : f32
    %46 = vector.broadcast %cst_29 : f32 to vector<4x1xf32>
    %47 = arith.mulf %46, %33 : vector<4x1xf32>
    %48 = arith.addf %17, %47 : vector<4x1xf32>
    %c2_i32 = arith.constant 2 : i32
    %49 = arith.muli %arg1, %c2_i32 : i32
    %50 = arith.addi %49, %c0_i32_12 : i32
    %c2_i32_30 = arith.constant 2 : i32
    %51 = arith.cmpi slt, %50, %c2_i32_30 : i32
    %52 = arith.select %51, %48, %17 : vector<4x1xf32>
    %c0_31 = arith.constant 0 : index
    %c0_32 = arith.constant 0 : index
    %53 = vector.load %arg6[%c0_31, %c0_32] : memref<4x1xf32, #tpu.memory_space<vmem>>, vector<4x1xf32>
    tpu.vector_store %arg6[%c0_31, %c0_32], %52 {strides = array<i32>} : memref<4x1xf32, #tpu.memory_space<vmem>>, vector<4x1xf32>,
    %54 = arith.select %51, %45, %18 : vector<4x1xf32>
    %c0_33 = arith.constant 0 : index
    %c0_34 = arith.constant 0 : index
    %55 = vector.load %arg7[%c0_33, %c0_34] : memref<4x1xf32, #tpu.memory_space<vmem>>, vector<4x1xf32>
    tpu.vector_store %arg7[%c0_33, %c0_34], %54 {strides = array<i32>} : memref<4x1xf32, #tpu.memory_space<vmem>>, vector<4x1xf32>,
    %c1_i32 = arith.constant 1 : i32
    %c0_35 = arith.constant 0 : index
    %c0_36 = arith.constant 0 : index
    %56 = vector.load %arg6[%c0_35, %c0_36] : memref<4x1xf32, #tpu.memory_space<vmem>>, vector<4x1xf32>
    %c0_37 = arith.constant 0 : index
    %c0_38 = arith.constant 0 : index
    %57 = vector.load %arg7[%c0_37, %c0_38] : memref<4x1xf32, #tpu.memory_space<vmem>>, vector<4x1xf32>
    %58 = arith.index_cast %c1_i32 : i32 to index
    %c0_39 = arith.constant 0 : index
    %c0_40 = arith.constant 0 : index
    %59 = vector.load %arg10[%58, %c0_39, %c0_40] : memref<2x4x1xf32, #tpu.memory_space<vmem>>, vector<1x4x1xf32>
    %60 = vector.shape_cast %59 : vector<1x4x1xf32> to vector<4x1xf32>
    %61 = vector.shape_cast %56 : vector<4x1xf32> to vector<1x4x1xf32>
    tpu.vector_store %arg10[%58, %c0_39, %c0_40], %61 {strides = array<i32>} : memref<2x4x1xf32, #tpu.memory_space<vmem>>, vector<1x4x1xf32>,
    %cst_41 = arith.constant 9.99999974E-6 : f32
    %62 = vector.broadcast %cst_41 : f32 to vector<4x1xf32>
    %63 = arith.addf %57, %62 : vector<4x1xf32>
    %64 = math.rsqrt %63 : vector<4x1xf32>
    %65 = arith.index_cast %c1_i32 : i32 to index
    %c0_42 = arith.constant 0 : index
    %c0_43 = arith.constant 0 : index
    %66 = vector.load %arg11[%65, %c0_42, %c0_43] : memref<2x4x1xf32, #tpu.memory_space<vmem>>, vector<1x4x1xf32>
    %67 = vector.shape_cast %66 : vector<1x4x1xf32> to vector<4x1xf32>
    %68 = vector.shape_cast %64 : vector<4x1xf32> to vector<1x4x1xf32>
    tpu.vector_store %arg11[%65, %c0_42, %c0_43], %68 {strides = array<i32>} : memref<2x4x1xf32, #tpu.memory_space<vmem>>, vector<1x4x1xf32>,
    %69 = arith.index_cast %c1_i32 : i32 to index
    %c0_44 = arith.constant 0 : index
    %c0_45 = arith.constant 0 : index
    %70 = vector.load %arg8[%69, %c0_44, %c0_45] : memref<2x4x1xf32, #tpu.memory_space<vmem>>, vector<1x4x1xf32>
    %71 = vector.shape_cast %70 : vector<1x4x1xf32> to vector<4x1xf32>
    %72 = arith.subf %71, %56 : vector<4x1xf32>
    %cst_46 = arith.constant 9.990000e-01 : f32
    %73 = vector.broadcast %cst_46 : f32 to vector<4x1xf32>
    %74 = arith.mulf %73, %57 : vector<4x1xf32>
    %75 = arith.index_cast %c1_i32 : i32 to index
    %c0_47 = arith.constant 0 : index
    %c0_48 = arith.constant 0 : index
    %76 = vector.load %arg9[%75, %c0_47, %c0_48] : memref<2x4x1xf32, #tpu.memory_space<vmem>>, vector<1x4x1xf32>
    %77 = vector.shape_cast %76 : vector<1x4x1xf32> to vector<4x1xf32>
    %cst_49 = arith.constant 1.000000e-03 : f32
    %78 = vector.broadcast %cst_49 : f32 to vector<4x1xf32>
    %79 = arith.mulf %78, %77 : vector<4x1xf32>
    %80 = arith.addf %74, %79 : vector<4x1xf32>
    %cst_50 = arith.constant 9.990000e-04 : f32
    %81 = vector.broadcast %cst_50 : f32 to vector<4x1xf32>
    %82 = arith.mulf %81, %72 : vector<4x1xf32>
    %83 = arith.mulf %82, %72 : vector<4x1xf32>
    %84 = arith.addf %80, %83 : vector<4x1xf32>
    %cst_51 = arith.constant 1.000000e-03 : f32
    %85 = vector.broadcast %cst_51 : f32 to vector<4x1xf32>
    %86 = arith.mulf %85, %72 : vector<4x1xf32>
    %87 = arith.addf %56, %86 : vector<4x1xf32>
    %c2_i32_52 = arith.constant 2 : i32
    %88 = arith.muli %arg1, %c2_i32_52 : i32
    %89 = arith.addi %88, %c1_i32 : i32
    %c2_i32_53 = arith.constant 2 : i32
    %90 = arith.cmpi slt, %89, %c2_i32_53 : i32
    %91 = arith.select %90, %87, %56 : vector<4x1xf32>
    %c0_54 = arith.constant 0 : index
    %c0_55 = arith.constant 0 : index
    %92 = vector.load %arg6[%c0_54, %c0_55] : memref<4x1xf32, #tpu.memory_space<vmem>>, vector<4x1xf32>
    tpu.vector_store %arg6[%c0_54, %c0_55], %91 {strides = array<i32>} : memref<4x1xf32, #tpu.memory_space<vmem>>, vector<4x1xf32>,
    %93 = arith.select %90, %84, %57 : vector<4x1xf32>
    %c0_56 = arith.constant 0 : index
    %c0_57 = arith.constant 0 : index
    %94 = vector.load %arg7[%c0_56, %c0_57] : memref<4x1xf32, #tpu.memory_space<vmem>>, vector<4x1xf32>
    tpu.vector_store %arg7[%c0_56, %c0_57], %93 {strides = array<i32>} : memref<4x1xf32, #tpu.memory_space<vmem>>, vector<4x1xf32>,
    %c2_i32_58 = arith.constant 2 : i32
    %c0_59 = arith.constant 0 : index
    %c0_60 = arith.constant 0 : index
    %c0_61 = arith.constant 0 : index
    %95 = vector.load %arg10[%c0_59, %c0_60, %c0_61] : memref<2x4x1xf32, #tpu.memory_space<vmem>>, vector<2x4x1xf32>
    %96 = vector.broadcast %95 : vector<2x4x1xf32> to vector<2x4x256xf32>
    %97 = arith.subf %3, %96 : vector<2x4x256xf32>
    %c0_62 = arith.constant 0 : index
    %c0_63 = arith.constant 0 : index
    %c0_64 = arith.constant 0 : index
    %98 = vector.load %arg11[%c0_62, %c0_63, %c0_64] : memref<2x4x1xf32, #tpu.memory_space<vmem>>, vector<2x4x1xf32>
    %99 = vector.broadcast %98 : vector<2x4x1xf32> to vector<2x4x256xf32>
    %100 = arith.mulf %97, %99 : vector<2x4x256xf32>
    %c0_65 = arith.constant 0 : index
    %c0_66 = arith.constant 0 : index
    %c0_67 = arith.constant 0 : index
    %101 = vector.load %arg3[%c0_65, %c0_66, %c0_67] : memref<2x4x256xf32, #tpu.memory_space<vmem>>, vector<2x4x256xf32>
    tpu.vector_store %arg3[%c0_65, %c0_66, %c0_67], %100 {strides = array<i32>} : memref<2x4x256xf32, #tpu.memory_space<vmem>>, vector<2x4x256xf32>,
    %c0_i32_68 = arith.constant 0 : i32
    %102 = arith.cmpi eq, %arg1, %c0_i32_68 : i32
    %103 = arith.extui %102 : i1 to i32
    %c0_i32_69 = arith.constant 0 : i32
    %104 = arith.cmpi ne, %103, %c0_i32_69 : i32
    scf.if %104 {
      %c0_70 = arith.constant 0 : index
      %c0_71 = arith.constant 0 : index
      %105 = vector.load %arg6[%c0_70, %c0_71] : memref<4x1xf32, #tpu.memory_space<vmem>>, vector<4x1xf32>
      %c0_72 = arith.constant 0 : index
      %c0_73 = arith.constant 0 : index
      %106 = vector.load %arg4[%c0_72, %c0_73] : memref<4x1xf32, #tpu.memory_space<vmem>>, vector<4x1xf32>
      tpu.vector_store %arg4[%c0_72, %c0_73], %105 {strides = array<i32>} : memref<4x1xf32, #tpu.memory_space<vmem>>, vector<4x1xf32>,
      %c0_74 = arith.constant 0 : index
      %c0_75 = arith.constant 0 : index
      %107 = vector.load %arg7[%c0_74, %c0_75] : memref<4x1xf32, #tpu.memory_space<vmem>>, vector<4x1xf32>
      %c0_76 = arith.constant 0 : index
      %c0_77 = arith.constant 0 : index
      %108 = vector.load %arg5[%c0_76, %c0_77] : memref<4x1xf32, #tpu.memory_space<vmem>>, vector<4x1xf32>
      tpu.vector_store %arg5[%c0_76, %c0_77], %107 {strides = array<i32>} : memref<4x1xf32, #tpu.memory_space<vmem>>, vector<4x1xf32>,
    } else {
    }
    return
  }
  func.func @transform_0(%arg0: i32, %arg1: i32) -> (i32, i32, i32) {
    %c0_i32 = arith.constant 0 : i32
    %c0_i32_0 = arith.constant 0 : i32
    return %arg1, %arg0, %c0_i32 : i32, i32, i32
  }
  func.func @transform_1(%arg0: i32, %arg1: i32) -> (i32, i32, i32) {
    %c0_i32 = arith.constant 0 : i32
    %c0_i32_0 = arith.constant 0 : i32
    return %arg1, %arg0, %c0_i32 : i32, i32, i32
  }
  func.func @transform_2(%arg0: i32, %arg1: i32) -> (i32, i32) {
    %c0_i32 = arith.constant 0 : i32
    %c0_i32_0 = arith.constant 0 : i32
    return %arg0, %c0_i32 : i32, i32
  }
  func.func @transform_3(%arg0: i32, %arg1: i32) -> (i32, i32) {
    %c0_i32 = arith.constant 0 : i32
    %c0_i32_0 = arith.constant 0 : i32
    return %arg0, %c0_i32 : i32, i32
  }
}

</mosaic_0001>

<bundles_post_ra>
// kernel: tpu_custom_call.1
= control target key start
LH: loop header
LB: loop body
LE: loop exit
PB: predicated region body
PF: predicated region fallthrough
CT: control target
= control target key end

     0   :  { %9 = vsyncpa [#allocation9], 0  ;;  %s401_s0 = inlined_call_operand.hbm [shape: f32[2,4,256], index: 0, kind: input, shape index: {}]   ;;  %s402_s1 = inlined_call_operand.hbm [shape: f32[2,4,256], index: 1, kind: output, shape index: {0}]   ;;  %s403_s2 = inlined_call_operand.vmem [shape: f32[4,1], index: 2, kind: output, shape index: {1}]   ;;  %s404_s3 = inlined_call_operand.vmem [shape: f32[4,1], index: 3, kind: output, shape index: {2}]  }
   0x1   :  { %10 = vsyncpa [#allocation10], 0  ;;  %s305_s12 = smov [#allocation8]  }
   0x2   :  { %s16_s13 = sshll.u32 %s305_s12, 4  ;;  %s17_s13 = int_to_ptr.vmem [resolvable:$true] %s16_s13 }
   0x3   :  { %s269_s14 = scalar_lea.vmem %s17_s13, 256  ;;  %p274_p1 = scmp.lt.s32.totalorder %s17_s13, %s17_s13 }
   0x4   :  { %p270_p0 = scmp.ne.s32.totalorder %s17_s13, %s269_s14  ;;  %p275_p2 = scmp.lt.s32.totalorder %s269_s14, %s269_s14 }
   0x6   :  { %p276_p3 = por %p275_p2, %p274_p1 }
   0x8   :  { %p277_p4 = pnand %p276_p3, %p270_p0 }
   0xa   :  { %280 = shalt.err (!%p277_p4)
}
   0xb   :  { %s306_s15 = smov 128   ;;  %s307_s16 = smov 8  }
   0xc   :  { %22 = dma.hbm_to_vmem [thread:$0]  %s401_s0, 256, %s17_s13, [#allocation9], %s306_s15, %s306_s15, %s307_s16  }
   0xd   :  { %301 = dma.done.wait [#allocation9], 256  }
   0xe   :  { %302 = vsyncadd [#allocation9], 4294967040  ;;  %vm30_vm0 = vcmask 3072   ;;  %v308_v0 = vmov 0   ;;  %v309_v1 = vmov 1.0   ;;  %v310_v2 = vmov 0.0  }
   0xf   :  { %254 = vset.pattern.permute.xlu1 %v308_v0  ;;  %32 = vst.msk [vmem:[#allocation3] sm:$0xf] %vm30_vm0, %v309_v1  ;;  %253 = vset.pattern.permute.xlu0 %v308_v0  ;;  %31 = vst.msk [vmem:[#allocation2] sm:$0xf] %vm30_vm0, %v310_v2  ;;  %vm41_vm1 = vcmask 1043456   ;;  %v341_v3 = vld [vmem:[#allocation8] sm:$0xff]  ;;  %v59_v20 = vlaneseq }
  0x10   :  { %v343_v4 = vld [vmem:[#allocation8 + $0x8] sm:$0xff]  ;;  %v37_v5 = vcombine.high %v341_v3, %v341_v3  ;;  %v42_v6 = vsel %vm41_vm1, %v341_v3, 0.0  ;;  %v311_v18 = vmov 839922192   ;;  %s312_s21 = smov [#allocation11]  }
  0x11   :  { %v38_v7 = vcombine.high %v343_v4, %v343_v4  ;;  %v47_v8 = vsel %vm41_vm1, %v343_v4, 0.0  ;;  %v57_v19 = vunpack.c.l.s4 %v311_v18  ;;  %v60_v22 = vshrl.u32 %v59_v20, 7  ;;  %s225_s22 = sshll.u32 %s312_s21, 4  ;;  %s226_s22 = int_to_ptr.vmem [resolvable:$true] %s225_s22 }
  0x12   :  { %v43_v11 = vsel %vm41_vm1, %v37_v5, 0.0  ;;  %s281_s23 = scalar_lea.vmem %s226_s22, 256  ;;  %p286_p6 = scmp.lt.s32.totalorder %s226_s22, %s226_s22 }
  0x13   :  { %v48_v12 = vsel %vm41_vm1, %v38_v7, 0.0  ;;  %v44_v13 = vadd.f32 %v43_v11, %v42_v6  ;;  %v58_v21 = vunpack.c.0.s8 %v57_v19  ;;  %p282_p5 = scmp.ne.s32.totalorder %s226_s22, %s281_s23  ;;  %p287_p7 = scmp.lt.s32.totalorder %s281_s23, %s281_s23 }
  0x14   :  { %v49_v14 = vadd.f32 %v48_v12, %v47_v8 }
  0x15   :  { %45 = vadd.xlane.f32.xlu0 %v44_v13  ;;  %v360_v23 = vsub.s32 %v58_v21, %v60_v22  ;;  %p288_p8 = por %p287_p7, %p286_p6 }
  0x16   :  { %v353_v9 = vld [vmem:[#allocation3] sm:$0xf]  ;;  %50 = vadd.xlane.f32.xlu1 %v49_v14  ;;  %v99_v16 = vld [vmem:[#allocation2] sm:$0xf] }
  0x17   :  { %v102_v10 = vadd.f32 1e-05, %v353_v9  ;;  %101 = vst.msk [vmem:[#allocation6] sm:$0xf] %vm30_vm0, %v99_v16  ;;  %v107_v62 = vmul.f32 0.999, %v353_v9  ;;  %p289_p9 = pnand %p288_p8, %p282_p5 }
  0x19   :  { %257 = vrsqrt.f32 %v102_v10 }
  0x1e   :  { %v155_v52 = vld [vmem:[#allocation6] sm:$0xf] }
  0x26   :  { %v258_v15 = vpop.eup %257 }
  0x27   :  { %104 = vst.msk [vmem:[#allocation7] sm:$0xf] %vm30_vm0, %v258_v15 }
  0x2e   :  { %v183_v17 = vld [vmem:[#allocation7] sm:$0xf] }
  0x2f   :  { %187 = vperm.xlu1 %254, %v183_v17  }
  0x9e   :  { %v46_v24 = vpop.xlane.xlu0 %45 }
  0x9f   :  { %v51_v25 = vpop.xlane.xlu1 %50  ;;  %v52_v26 = vmul.f32 0.00390625, %v46_v24 }
  0xa0   :  { %v53_v27 = vmul.f32 0.00390625, %v51_v25 }
  0xa1   :  { %v62_v28 = vrot.slane %v52_v26, %v360_v23  ;;  %75 = vst.msk [vmem:[#allocation4] sm:$0xf] %vm30_vm0, %v52_v26 }
  0xa2   :  { %v69_v29 = vrot.slane %v53_v27, %v360_v23  ;;  %76 = vst.msk [vmem:[#allocation4 + $0x4] sm:$0xf] %vm30_vm0, %v53_v27 }
  0xa3   :  { %v72_v30 = vsub.f32 %v341_v3, %v62_v28 }
  0xa4   :  { %v73_v31 = vsub.f32 %v343_v4, %v69_v29 }
  0xa5   :  { %v77_v32 = vmul.f32 %v72_v30, %v72_v30 }
  0xa6   :  { %v78_v33 = vmul.f32 %v73_v31, %v73_v31 }
  0xa7   :  { %v81_v34 = vcombine.high %v77_v32, %v77_v32  ;;  %v85_v39 = vsel %vm41_vm1, %v77_v32, 0.0 }
  0xa8   :  { %v82_v35 = vcombine.high %v78_v33, %v78_v33  ;;  %v90_v36 = vsel %vm41_vm1, %v78_v33, 0.0  ;;  %v105_v37 = vld [vmem:[#allocation4] sm:$0xf] }
  0xa9   :  { %v106_v38 = vsub.f32 %v105_v37, %v99_v16  ;;  %v86_v40 = vsel %vm41_vm1, %v81_v34, 0.0  ;;  %v134_v46 = vld [vmem:[#allocation4 + $0x4] sm:$0xf] }
  0xaa   :  { %v91_v41 = vsel %vm41_vm1, %v82_v35, 0.0  ;;  %v87_v42 = vadd.f32 %v86_v40, %v85_v39  ;;  %v188_v54 = vpop.permute.xlu1 %187 }
  0xab   :  { %v92_v43 = vadd.f32 %v91_v41, %v90_v36  ;;  %v114_v44 = vmul.f32 0.001, %v106_v38  ;;  %v111_v60 = vmul.f32 0.000999, %v106_v38  ;;  %v199_v61 = vrot.slane %v188_v54, %v360_v23 }
  0xac   :  { %88 = vadd.xlane.f32.xlu0 %v87_v42 }
  0xad   :  { %93 = vadd.xlane.f32.xlu1 %v92_v43  ;;  %v115_v45 = vadd.f32 %v114_v44, %v99_v16  ;;  %v112_v5 = vmul.f32 %v111_v60, %v106_v38 }
  0xaf   :  { %122 = vst.msk [vmem:[#allocation2] sm:$0xf] %vm30_vm0, %v115_v45 }
  0xb6   :  { %v125_v47 = vld [vmem:[#allocation2] sm:$0xf] }
  0xb7   :  { %128 = vst.msk [vmem:[#allocation6 + $0x4] sm:$0xf] %vm30_vm0, %v125_v47  ;;  %v135_v48 = vsub.f32 %v134_v46, %v125_v47 }
  0xb9   :  { %v144_v49 = vmul.f32 0.001, %v135_v48  ;;  %v141_v12 = vmul.f32 0.000999, %v135_v48 }
  0xbb   :  { %v145_v50 = vadd.f32 %v144_v49, %v125_v47  ;;  %v142_v16 = vmul.f32 %v141_v12, %v135_v48 }
  0xbd   :  { %152 = vst.msk [vmem:[#allocation2] sm:$0xf] %vm30_vm0, %v145_v50 }
  0xbe   :  { %v156_v51 = vld [vmem:[#allocation6 + $0x4] sm:$0xf] }
  0xbf   :  { %163 = vperm.xlu1 %254, %v156_v51  }
  0xc2   :  { %159 = vperm.xlu0 %253, %v155_v52  }
  0xc4   :  { %v216_v53 = vld [vmem:[#allocation2] sm:$0xf] }
  0xc5   :  { %217 = vst.msk [vmem:[%s403_s2] sm:$0xf] %vm30_vm0, %v216_v53 }
 0x135   :  { %v89_v55 = vpop.xlane.xlu0 %88 }
 0x136   :  { %v94_v56 = vpop.xlane.xlu1 %93  ;;  %v95_v57 = vmul.f32 0.00390625, %v89_v55 }
 0x137   :  { %v96_v58 = vmul.f32 0.00390625, %v94_v56 }
 0x138   :  { %97 = vst.msk [vmem:[#allocation5] sm:$0xf] %vm30_vm0, %v95_v57 }
 0x139   :  { %98 = vst.msk [vmem:[#allocation5 + $0x4] sm:$0xf] %vm30_vm0, %v96_v58 }
 0x13a   :  { %v164_v20 = vpop.permute.xlu1 %163 }
 0x13b   :  { %v178_v21 = vrot.slane %v164_v20, %v360_v23 }
 0x13d   :  { %v160_v59 = vpop.permute.xlu0 %159  ;;  %v182_v24 = vsub.f32 %v343_v4, %v178_v21 }
 0x13e   :  { %v171_v63 = vrot.slane %v160_v59, %v360_v23 }
 0x13f   :  { %v108_v0 = vld [vmem:[#allocation5] sm:$0xf] }
 0x140   :  { %v109_v1 = vmul.f32 0.001, %v108_v0  ;;  %v181_v2 = vsub.f32 %v341_v3, %v171_v63  ;;  %v138_v10 = vld [vmem:[#allocation5 + $0x4] sm:$0xf] }
 0x141   :  { %v139_v11 = vmul.f32 0.001, %v138_v10 }
 0x142   :  { %v110_v6 = vadd.f32 %v109_v1, %v107_v62  ;;  %v209_v7 = vmul.f32 %v199_v61, %v181_v2 }
 0x144   :  { %v113_v8 = vadd.f32 %v112_v5, %v110_v6  ;;  %211 = vst [vmem:[#allocation11] sm:$0xff] %v209_v7 }
 0x146   :  { %124 = vst.msk [vmem:[#allocation3] sm:$0xf] %vm30_vm0, %v113_v8 }
 0x14d   :  { %v126_v13 = vld [vmem:[#allocation3] sm:$0xf] }
 0x14e   :  { %v129_v14 = vadd.f32 1e-05, %v126_v13  ;;  %v136_v15 = vmul.f32 0.999, %v126_v13 }
 0x150   :  { %259 = vrsqrt.f32 %v129_v14  ;;  %v140_v9 = vadd.f32 %v139_v11, %v136_v15 }
 0x152   :  { %v143_v17 = vadd.f32 %v142_v16, %v140_v9 }
 0x154   :  { %154 = vst.msk [vmem:[#allocation3] sm:$0xf] %vm30_vm0, %v143_v17 }
 0x15b   :  { %v218_v3 = vld [vmem:[#allocation3] sm:$0xf] }
 0x15c   :  { %219 = vst.msk [vmem:[%s404_s3] sm:$0xf] %vm30_vm0, %v218_v3 }
 0x15d   :  { %v260_v18 = vpop.eup %259 }
 0x15e   :  { %132 = vst.msk [vmem:[#allocation7 + $0x4] sm:$0xf] %vm30_vm0, %v260_v18 }
 0x165   :  { %v184_v19 = vld [vmem:[#allocation7 + $0x4] sm:$0xf] }
 0x166   :  { %191 = vperm.xlu1 %254, %v184_v19  }
 0x1e1   :  { %v192_v22 = vpop.permute.xlu1 %191 }
 0x1e2   :  { %v206_v25 = vrot.slane %v192_v22, %v360_v23 }
 0x1e4   :  { %v210_v26 = vmul.f32 %v206_v25, %v182_v24 }
 0x1e6   :  { %212 = vst [vmem:[#allocation11 + $0x8] sm:$0xff] %v210_v26 }
 0x1e7   :  { %292 = shalt.err (!%p289_p9)
}
 0x1e8   :  { %231 = dma.vmem_to_hbm [thread:$0]  %s226_s22, 256, %s402_s1, [#allocation10], %s306_s15, %s306_s15, %s307_s16  }
 0x1e9   :  { %303 = dma.done.wait [#allocation10], 256  }
 0x1ea   :  { %304 = vsyncadd [#allocation10], 4294967040 }
 0x1eb   :  { %243 = vsyncpa [#allocation9], 1 }
 0x1ec   :  { %244 = vsyncpa [#allocation10], 1 }

</bundles_post_ra>
